<compile_context>
chip_gen: v7x
topology: tpu7x:2x2x1
jax: 0.10.0
libtpu: 0.0.40
codegen_flags: <defaults>
</compile_context>

<pallas_src>
import functools

import jax
import jax.numpy as jnp
from jax.experimental import pallas as pl
from jax.experimental.pallas import tpu as pltpu

ALPHA = 0.25
GAMMA = 2.0

_LANE = 128                # lane width of the slab (last dim)
_ROW_ALIGN = 32            # sublane alignment valid for f32 / bf16 / int8 blocks
_TARGET_BLOCK_ROWS = 4096  # 2 MiB f32 per stream per block


def _cdiv(a, b):
    return (a + b - 1) // b


def _round_up(a, b):
    return _cdiv(a, b) * b


def _num_tensorcores():
    """2 on v7x (2 TensorCores / chip), 1 on v5e / v6e / unknown."""
    try:
        kind = jax.devices()[0].device_kind.lower()
    except Exception:
        return 1
    if "v7" in kind or "7x" in kind:
        return 2
    return 1


def _focal_kernel(logits_ref, label_ref, out_ref, *, alpha, gamma):
    # Cast to f32 inside the kernel (inputs may be bf16 / int8 / bool).
    x = logits_ref[...].astype(jnp.float32)
    y = label_ref[...].astype(jnp.float32)

    # pt = pred*y + (1-pred)*(1-y) = sigmoid((2y-1)*x)   [hard labels y in {0,1}]
    z = (2.0 * y - 1.0) * x

    # Numerically stable formulation (no inf/NaN for large |logits|).
    u = jnp.exp(-jnp.abs(z))                         # EUP exp, u in (0, 1]
    r = pl.reciprocal(1.0 + u)                       # exact recip (memory-bound: free)
    one_minus_pt = jnp.where(z >= 0.0, u * r, r)     # = sigmoid(-z) = 1 - pt
    log_pt = jnp.minimum(z, 0.0) - jnp.log(1.0 + u)  # = log(sigmoid(z)) = log(pt)

    alpha_t = alpha * y + (1.0 - alpha) * (1.0 - y)

    # (1 - pt) ** gamma with static dispatch; gamma == 2.0 -> explicit square.
    if gamma == 0.0:
        diff = 1.0
    elif gamma == 1.0:
        diff = one_minus_pt
    elif gamma == 2.0:
        diff = one_minus_pt * one_minus_pt
    else:
        diff = one_minus_pt ** gamma

    out_ref[...] = (-alpha_t * diff * log_pt).astype(out_ref.dtype)


def focal_loss(logits, label, *, alpha=ALPHA, gamma=GAMMA,
               out_dtype=jnp.float32, target_block_rows=_TARGET_BLOCK_ROWS):
    """Pallas TPU implementation of Focal_loss.forward.

    logits, label: same total number of elements, any shape/dtype; the total
    must be even (PyTorch's `.view(-1, 2)` requires it).  Labels are assumed
    hard (0/1).  Returns FL with shape (total // 2, 2), dtype `out_dtype`
    (f32 by default to match PyTorch).
    """
    logits_flat = jnp.reshape(logits, (-1,))
    label_flat = jnp.reshape(label, (-1,))
    n = logits_flat.shape[0]
    assert label_flat.shape[0] == n, "logits/label element counts must match"
    assert n % 2 == 0, "total element count must be even for .view(-1, 2)"
    assert n > 0

    # ---- Layout: (rows, 128) lane-dense slab --------------------------------
    rows = _cdiv(n, _LANE)
    pad = rows * _LANE - n
    if pad:  # rare: only when n is not a multiple of 128 (pad <= 127 elements)
        # Zero-padding is safe: z = 0 -> finite pt / log(pt); sliced off below.
        logits_flat = jnp.pad(logits_flat, (0, pad))
        label_flat = jnp.pad(label_flat, (0, pad))

    logits_2d = logits_flat.reshape(rows, _LANE)
    label_2d = label_flat.reshape(rows, _LANE)

    # ---- Tile selection ------------------------------------------------------
    num_tc = _num_tensorcores()
    if num_tc > 1:
        # Balanced split across TensorCores: block count is a multiple of num_tc.
        num_blocks = num_tc * max(1, _cdiv(rows, num_tc * target_block_rows))
    else:
        # Single-TC chips: grid is a serial loop -> use as few blocks as possible.
        num_blocks = max(1, _cdiv(rows, target_block_rows))

    if num_blocks == 1:
        block_rows = rows  # full-array block: exempt from (8,128) divisibility
    else:
        block_rows = _round_up(_cdiv(rows, num_blocks), _ROW_ALIGN)
        if block_rows >= rows:  # tiny input: fall back to one full block
            block_rows = rows

    grid = _cdiv(rows, block_rows)  # partial last block handled (masked) by Pallas

    kernel = functools.partial(_focal_kernel, alpha=float(alpha), gamma=float(gamma))

    fl_2d = pl.pallas_call(
        kernel,
        out_shape=jax.ShapeDtypeStruct((rows, _LANE), out_dtype),
        grid_spec=pltpu.PrefetchScalarGridSpec(
            num_scalar_prefetch=0,
            grid=(grid,),
            in_specs=[
                pl.BlockSpec((block_rows, _LANE), lambda i: (i, 0)),
                pl.BlockSpec((block_rows, _LANE), lambda i: (i, 0)),
            ],
            out_specs=pl.BlockSpec((block_rows, _LANE), lambda i: (i, 0)),
        ),
        compiler_params=pltpu.CompilerParams(
            dimension_semantics=("parallel",),
        ),
    )(logits_2d, label_2d)

    fl_flat = fl_2d.reshape(-1)
    if pad:
        fl_flat = fl_flat[:n]
    return fl_flat.reshape(-1, 2)


def focal_loss_ref(logits, label, *, alpha=ALPHA, gamma=GAMMA):
    """Plain-JAX reference matching the PyTorch forward."""
    pred = jax.nn.sigmoid(jnp.reshape(logits, (-1,)).astype(jnp.float32))
    lab = jnp.reshape(label, (-1,)).astype(jnp.float32)
    alpha_t = alpha * lab + (1.0 - alpha) * (1.0 - lab)
    pt = pred * lab + (1.0 - pred) * (1.0 - lab)
    diff = (1.0 - pt) ** gamma
    fl = -1.0 * alpha_t * diff * jnp.log(pt)
    return fl.reshape(-1, 2)


if __name__ == "__main__":
    key = jax.random.PRNGKey(0)
    k1, k2 = jax.random.split(key)

    # Case 1: small f32 per-pixel boundary logits, single full-array block.
    logits = jax.random.normal(k1, (2, 4, 16, 16), dtype=jnp.float32)
    label = (jax.random.uniform(k2, (2, 4, 16, 16)) > 0.5).astype(jnp.float32)
    out = jax.block_until_ready(focal_loss(logits, label))
    ref = focal_loss_ref(logits, label)
    assert out.shape == ref.shape == (2 * 4 * 16 * 16 // 2, 2)
    assert jnp.allclose(out, ref, rtol=5e-3, atol=1e-5), "mismatch (f32)"

    # Case 2: native low-precision dtypes (bf16 logits, int8 labels), n % 128 == 0.
    k3, k4 = jax.random.split(k2)
    logits2 = jax.random.normal(k3, (2, 4, 64, 64), dtype=jnp.float32).astype(jnp.bfloat16)
    label2 = (jax.random.uniform(k4, (2, 4, 64, 64)) > 0.5).astype(jnp.int8)
    out2 = jax.block_until_ready(focal_loss(logits2, label2))
    ref2 = focal_loss_ref(logits2, label2)
    assert out2.shape == ref2.shape == (2 * 4 * 64 * 64 // 2, 2)
    assert jnp.allclose(out2, ref2, rtol=5e-3, atol=1e-5), "mismatch (bf16/int8)"

    # Case 3: multi-block grid with a masked partial last block (small target
    # block size used only to exercise the path at a small test shape).
    k5, k6 = jax.random.split(k4)
    logits3 = jax.random.normal(k5, (2, 4, 64, 70), dtype=jnp.float32)
    label3 = (jax.random.uniform(k6, (2, 4, 64, 70)) > 0.5).astype(jnp.float32)
    out3 = jax.block_until_ready(focal_loss(logits3, label3, target_block_rows=64))
    ref3 = focal_loss_ref(logits3, label3)
    assert out3.shape == ref3.shape == (2 * 4 * 64 * 70 // 2, 2)
    assert jnp.allclose(out3, ref3, rtol=5e-3, atol=1e-5), "mismatch (multi-block)"

    # Case 4: n not a multiple of 128 (tiny pad path).
    k7, k8 = jax.random.split(k6)
    logits4 = jax.random.normal(k7, (2, 3, 17, 10), dtype=jnp.float32)
    label4 = (jax.random.uniform(k8, (2, 3, 17, 10)) > 0.5).astype(jnp.float32)
    out4 = jax.block_until_ready(focal_loss(logits4, label4))
    ref4 = focal_loss_ref(logits4, label4)
    assert out4.shape == ref4.shape == (2 * 3 * 17 * 10 // 2, 2)
    assert jnp.allclose(out4, ref4, rtol=5e-3, atol=1e-5), "mismatch (padded)"

    print("KERNEL_OK")
</pallas_src>

<mosaic_0001>
module attributes {stable_mosaic.version = 11 : i64} {
  func.func @_focal_kernel(%arg0: i32, %arg1: memref<16x128xf32, #tpu.memory_space<vmem>>, %arg2: memref<16x128xf32, #tpu.memory_space<vmem>>, %arg3: memref<16x128xf32, #tpu.memory_space<vmem>>) attributes {dimension_semantics = [#tpu.dimension_semantics<parallel>], iteration_bounds = array<i64: 1>, scalar_prefetch = 0 : i64, scratch_operands = 0 : i64, tpu.core_type = #tpu.core_type<tc>, window_params = [{transform_indices = @transform_0, window_bounds = array<i64: 16, 128>}, {transform_indices = @transform_1, window_bounds = array<i64: 16, 128>}, {transform_indices = @transform_2, window_bounds = array<i64: 16, 128>}]} {
    %c0 = arith.constant 0 : index
    %c0_0 = arith.constant 0 : index
    %0 = vector.load %arg1[%c0, %c0_0] : memref<16x128xf32, #tpu.memory_space<vmem>>, vector<16x128xf32>
    %c0_1 = arith.constant 0 : index
    %c0_2 = arith.constant 0 : index
    %1 = vector.load %arg2[%c0_1, %c0_2] : memref<16x128xf32, #tpu.memory_space<vmem>>, vector<16x128xf32>
    %cst = arith.constant 2.000000e+00 : f32
    %2 = vector.broadcast %cst : f32 to vector<16x128xf32>
    %3 = arith.mulf %2, %1 : vector<16x128xf32>
    %cst_3 = arith.constant 1.000000e+00 : f32
    %4 = vector.broadcast %cst_3 : f32 to vector<16x128xf32>
    %5 = arith.subf %3, %4 : vector<16x128xf32>
    %6 = arith.mulf %5, %0 : vector<16x128xf32>
    %7 = math.absf %6 : vector<16x128xf32>
    %cst_4 = arith.constant 0.000000e+00 : f32
    %8 = vector.broadcast %cst_4 : f32 to vector<16x128xf32>
    %9 = arith.subf %8, %7 : vector<16x128xf32>
    %10 = math.exp %9 : vector<16x128xf32>
    %cst_5 = arith.constant 1.000000e+00 : f32
    %11 = vector.broadcast %cst_5 : f32 to vector<16x128xf32>
    %12 = arith.addf %11, %10 : vector<16x128xf32>
    %13 = tpu.reciprocal %12 : vector<16x128xf32> -> vector<16x128xf32>
    %cst_6 = arith.constant 0.000000e+00 : f32
    %14 = vector.broadcast %cst_6 : f32 to vector<16x128xf32>
    %15 = arith.cmpf oge, %6, %14 : vector<16x128xf32>
    %16 = arith.mulf %10, %13 : vector<16x128xf32>
    %17 = arith.select %15, %16, %13 : vector<16x128xi1>, vector<16x128xf32>
    %cst_7 = arith.constant 0.000000e+00 : f32
    %18 = vector.broadcast %cst_7 : f32 to vector<16x128xf32>
    %19 = arith.minimumf %6, %18 : vector<16x128xf32>
    %cst_8 = arith.constant 1.000000e+00 : f32
    %20 = vector.broadcast %cst_8 : f32 to vector<16x128xf32>
    %21 = arith.addf %20, %10 : vector<16x128xf32>
    %22 = math.log %21 : vector<16x128xf32>
    %23 = arith.subf %19, %22 : vector<16x128xf32>
    %cst_9 = arith.constant 2.500000e-01 : f32
    %24 = vector.broadcast %cst_9 : f32 to vector<16x128xf32>
    %25 = arith.mulf %24, %1 : vector<16x128xf32>
    %cst_10 = arith.constant 1.000000e+00 : f32
    %26 = vector.broadcast %cst_10 : f32 to vector<16x128xf32>
    %27 = arith.subf %26, %1 : vector<16x128xf32>
    %cst_11 = arith.constant 7.500000e-01 : f32
    %28 = vector.broadcast %cst_11 : f32 to vector<16x128xf32>
    %29 = arith.mulf %28, %27 : vector<16x128xf32>
    %30 = arith.addf %25, %29 : vector<16x128xf32>
    %31 = arith.mulf %17, %17 : vector<16x128xf32>
    %cst_12 = arith.constant 0.000000e+00 : f32
    %32 = vector.broadcast %cst_12 : f32 to vector<16x128xf32>
    %33 = arith.subf %32, %30 : vector<16x128xf32>
    %34 = arith.mulf %33, %31 : vector<16x128xf32>
    %35 = arith.mulf %34, %23 : vector<16x128xf32>
    %c0_13 = arith.constant 0 : index
    %c0_14 = arith.constant 0 : index
    %36 = vector.load %arg3[%c0_13, %c0_14] : memref<16x128xf32, #tpu.memory_space<vmem>>, vector<16x128xf32>
    tpu.vector_store %arg3[%c0_13, %c0_14], %35 {strides = array<i32>} : memref<16x128xf32, #tpu.memory_space<vmem>>, vector<16x128xf32>,
    return
  }
  func.func @transform_0(%arg0: i32) -> (i32, i32) {
    %c0_i32 = arith.constant 0 : i32
    %c0_i32_0 = arith.constant 0 : i32
    return %arg0, %c0_i32 : i32, i32
  }
  func.func @transform_1(%arg0: i32) -> (i32, i32) {
    %c0_i32 = arith.constant 0 : i32
    %c0_i32_0 = arith.constant 0 : i32
    return %arg0, %c0_i32 : i32, i32
  }
  func.func @transform_2(%arg0: i32) -> (i32, i32) {
    %c0_i32 = arith.constant 0 : i32
    %c0_i32_0 = arith.constant 0 : i32
    return %arg0, %c0_i32 : i32, i32
  }
}

</mosaic_0001>

<bundles_post_ra>
// kernel: tpu_custom_call.1
= control target key start
LH: loop header
LB: loop body
LE: loop exit
PB: predicated region body
PF: predicated region fallthrough
CT: control target
= control target key end

     0   :  { %7 = vsyncpa [#allocation3], 0  ;;  %s268_s0 = inlined_call_operand.hbm [shape: f32[16,128], index: 0, kind: input, shape index: {}]   ;;  %s269_s1 = inlined_call_operand.hbm [shape: f32[16,128], index: 1, kind: input, shape index: {}]   ;;  %s270_s2 = inlined_call_operand.hbm [shape: f32[16,128], index: 2, kind: output, shape index: {}]  }
   0x1   :  { %8 = vsyncpa [#allocation6], 0 }
   0x2   :  { %9 = vsyncpa [#allocation4], 0  ;;  %s203_s9 = smov [#allocation2]   ;;  %s131_s13 = scalar_lea.hbm %s268_s0, 256 }
   0x3   :  { %s15_s10 = sshll.u32 %s203_s9, 4  ;;  %p132_p0 = scmp.ne.s32.totalorder %s268_s0, %s131_s13  ;;  %s16_s10 = int_to_ptr.vmem [resolvable:$true] %s15_s10 }
   0x4   :  { %p135_p1 = scmp.lt.u32.totalorder %s131_s13, %s268_s0 }
   0x6   :  { %p137_p2 = pnand %p135_p1, %p132_p0 }
   0x8   :  { %140 = shalt.err (!%p137_p2)
}
   0x9   :  { %s141_s18 = scalar_lea.vmem %s16_s10, 256  ;;  %p146_p4 = scmp.lt.s32.totalorder %s16_s10, %s16_s10 }
   0xa   :  { %p142_p3 = scmp.ne.s32.totalorder %s16_s10, %s141_s18  ;;  %p147_p5 = scmp.lt.s32.totalorder %s141_s18, %s141_s18 }
   0xc   :  { %p148_p6 = por %p147_p5, %p146_p4 }
   0xe   :  { %p149_p7 = pnand %p148_p6, %p142_p3 }
  0x10   :  { %152 = shalt.err (!%p149_p7)
}
  0x11   :  { %s204_s19 = smov 128   ;;  %s205_s20 = smov 8  }
  0x12   :  { %21 = dma.hbm_to_vmem [thread:$0]  %s268_s0, 256, %s16_s10, [#allocation3], %s204_s19, %s204_s19, %s205_s20  }
  0x13   :  { %s206_s23 = smov [#allocation5]   ;;  %s153_s27 = scalar_lea.hbm %s269_s1, 256 }
  0x14   :  { %s27_s24 = sshll.u32 %s206_s23, 4  ;;  %p154_p8 = scmp.ne.s32.totalorder %s269_s1, %s153_s27  ;;  %s28_s24 = int_to_ptr.vmem [resolvable:$true] %s27_s24 }
  0x15   :  { %p157_p9 = scmp.lt.u32.totalorder %s153_s27, %s269_s1 }
  0x17   :  { %p159_p10 = pnand %p157_p9, %p154_p8 }
  0x19   :  { %162 = shalt.err (!%p159_p10)
}
  0x1a   :  { %s163_s4 = scalar_lea.vmem %s28_s24, 256  ;;  %p168_p12 = scmp.lt.s32.totalorder %s28_s24, %s28_s24 }
  0x1b   :  { %p164_p11 = scmp.ne.s32.totalorder %s28_s24, %s163_s4  ;;  %p169_p13 = scmp.lt.s32.totalorder %s163_s4, %s163_s4 }
  0x1d   :  { %p170_p0 = por %p169_p13, %p168_p12 }
  0x1f   :  { %p171_p1 = pnand %p170_p0, %p164_p11 }
  0x21   :  { %174 = shalt.err (!%p171_p1)
}
  0x22   :  { %33 = dma.hbm_to_vmem [thread:$0]  %s269_s1, 256, %s28_s24, [#allocation6], %s204_s19, %s204_s19, %s205_s20  }
  0x23   :  { %197 = dma.done.wait [#allocation3], 256  }
  0x24   :  { %198 = vsyncadd [#allocation3], 4294967040 }
  0x25   :  { %199 = dma.done.wait [#allocation6], 256  }
  0x26   :  { %200 = vsyncadd [#allocation6], 4294967040  ;;  %v42_v0 = vld [vmem:[#allocation5] sm:$0xff]  ;;  %v43_v2 = vld [vmem:[#allocation5 + $0x8] sm:$0xff]  ;;  %s207_s1 = smov [#allocation7]  }
  0x27   :  { %v44_v1 = vmul.f32 2.0, %v42_v0  ;;  %v40_v3 = vld [vmem:[#allocation2] sm:$0xff]  ;;  %v45_v4 = vmul.f32 2.0, %v43_v2  ;;  %v41_v6 = vld [vmem:[#allocation2 + $0x8] sm:$0xff]  ;;  %v78_v20 = vsub.f32 1.0, %v42_v0  ;;  %v79_v21 = vsub.f32 1.0, %v43_v2 }
  0x28   :  { %v76_v22 = vmul.f32 0.25, %v42_v0  ;;  %v77_v24 = vmul.f32 0.25, %v43_v2  ;;  %s99_s6 = sshll.u32 %s207_s1, 4  ;;  %s100_s6 = int_to_ptr.vmem [resolvable:$true] %s99_s6 }
  0x29   :  { %v112_v5 = vadd.f32 -1.0, %v44_v1  ;;  %v113_v7 = vadd.f32 -1.0, %v45_v4  ;;  %v80_v23 = vmul.f32 0.75, %v78_v20  ;;  %v81_v25 = vmul.f32 0.75, %v79_v21  ;;  %s175_s7 = scalar_lea.vmem %s100_s6, 256  ;;  %p180_p3 = scmp.lt.s32.totalorder %s100_s6, %s100_s6 }
  0x2a   :  { %p176_p2 = scmp.ne.s32.totalorder %s100_s6, %s175_s7  ;;  %p181_p4 = scmp.lt.s32.totalorder %s175_s7, %s175_s7 }
  0x2b   :  { %v48_v8 = vmul.f32 %v112_v5, %v40_v3  ;;  %v49_v9 = vmul.f32 %v113_v7, %v41_v6  ;;  %v82_v26 = vadd.f32 %v80_v23, %v76_v22  ;;  %v83_v29 = vadd.f32 %v81_v25, %v77_v24 }
  0x2c   :  { %p182_p5 = por %p181_p4, %p180_p3 }
  0x2d   :  { %v50_v10 = vand.u32 2147483647, %v48_v8  ;;  %v51_v11 = vand.u32 2147483647, %v49_v9  ;;  %vm62_vm0 = vcmp.ge.f32.partialorder %v48_v8, 0.0  ;;  %v68_v28 = vmin.f32 %v48_v8, 0.0 }
  0x2e   :  { %v86_v34 = vsub.f32 0.0, %v82_v26  ;;  %vm63_vm1 = vcmp.ge.f32.partialorder %v49_v9, 0.0  ;;  %v69_v35 = vmin.f32 %v49_v9, 0.0  ;;  %v87_v42 = vsub.f32 0.0, %v83_v29  ;;  %p183_p6 = pnand %p182_p5, %p176_p2 }
  0x2f   :  { %v52_v12 = vsub.f32 0.0, %v50_v10  ;;  %v53_v13 = vsub.f32 0.0, %v51_v11 }
  0x31   :  { %v54_v14 = vmul.f32 1.442695, %v52_v12  ;;  %v56_v15 = vmul.f32 1.442695, %v53_v13 }
  0x33   :  { %119 = vpow2.f32 %v54_v14 }
  0x34   :  { %121 = vpow2.f32 %v56_v15 }
  0x3d   :  { %v120_v16 = vpop.eup %119 }
  0x3e   :  { %v122_v17 = vpop.eup %121  ;;  %v58_v18 = vadd.f32 1.0, %v120_v16 }
  0x3f   :  { %v59_v19 = vadd.f32 1.0, %v122_v17 }
  0x40   :  { %123 = vrcp.f32 %v58_v18 }
  0x41   :  { %125 = vlog2.f32 %v58_v18 }
  0x42   :  { %127 = vrcp.f32 %v59_v19 }
  0x43   :  { %129 = vlog2.f32 %v59_v19 }
  0x4a   :  { %v124_v27 = vpop.eup %123 }
  0x4b   :  { %v126_v30 = vpop.eup %125  ;;  %v64_v31 = vmul.f32 %v124_v27, %v120_v16 }
  0x4c   :  { %v128_v32 = vpop.eup %127  ;;  %v71_v33 = vmul.f32 0.6931472, %v126_v30 }
  0x4d   :  { %v130_v36 = vpop.eup %129  ;;  %v66_v37 = vsel %vm62_vm0, %v64_v31, %v124_v27  ;;  %v65_v38 = vmul.f32 %v128_v32, %v122_v17 }
  0x4e   :  { %v74_v39 = vsub.f32 %v68_v28, %v71_v33  ;;  %v84_v40 = vmul.f32 %v66_v37, %v66_v37  ;;  %v73_v41 = vmul.f32 0.6931472, %v130_v36 }
  0x4f   :  { %v67_v43 = vsel %vm63_vm1, %v65_v38, %v128_v32 }
  0x50   :  { %v88_v44 = vmul.f32 %v86_v34, %v84_v40  ;;  %v75_v45 = vsub.f32 %v69_v35, %v73_v41  ;;  %v85_v46 = vmul.f32 %v67_v43, %v67_v43 }
  0x52   :  { %v90_v47 = vmul.f32 %v88_v44, %v74_v39  ;;  %v89_v48 = vmul.f32 %v87_v42, %v85_v46 }
  0x54   :  { %92 = vst [vmem:[#allocation7] sm:$0xff] %v90_v47  ;;  %v91_v49 = vmul.f32 %v89_v48, %v75_v45 }
  0x56   :  { %93 = vst [vmem:[#allocation7 + $0x8] sm:$0xff] %v91_v49 }
  0x57   :  { %186 = shalt.err (!%p183_p6)
}
  0x58   :  { %s187_s10 = scalar_lea.hbm %s270_s2, 256 }
  0x59   :  { %p188_p7 = scmp.ne.s32.totalorder %s270_s2, %s187_s10  ;;  %p191_p8 = scmp.lt.u32.totalorder %s187_s10, %s270_s2 }
  0x5b   :  { %p193_p9 = pnand %p191_p8, %p188_p7 }
  0x5d   :  { %196 = shalt.err (!%p193_p9)
}
  0x5e   :  { %105 = dma.vmem_to_hbm [thread:$0]  %s100_s6, 256, %s270_s2, [#allocation4], %s204_s19, %s204_s19, %s205_s20  }
  0x5f   :  { %201 = dma.done.wait [#allocation4], 256  }
  0x60   :  { %202 = vsyncadd [#allocation4], 4294967040 }
  0x61   :  { %109 = vsyncpa [#allocation3], 1 }
  0x62   :  { %110 = vsyncpa [#allocation6], 1 }
  0x63   :  { %111 = vsyncpa [#allocation4], 1 }

</bundles_post_ra>
